<compile_context>
chip_gen: v6e
topology: v6e:2x2x1
jax: 0.10.0
libtpu: 0.0.40
codegen_flags: <defaults>
</compile_context>

<pallas_src>
import functools
import math

import jax
import jax.numpy as jnp
from jax import lax
from jax.experimental import pallas as pl
from jax.experimental.pallas import tpu as pltpu


def _round_up(n, m):
    return ((n + m - 1) // m) * m


def _attention_kernel(x_ref, wq_ref, wk_ref, wv_ref, bq_ref, bk_ref, bv_ref,
                      o_ref, *, scale):
    Bb, S, Fp = x_ref.shape
    Hp = wq_ref.shape[1]
    cdt = x_ref.dtype  # compute dtype for MXU inputs (bf16 inputs stay bf16)

    # Fused QKV projections on a single (Bb*S, Fp) row slab -> large-M matmul.
    x2 = x_ref[...].reshape(Bb * S, Fp)

    q = jnp.dot(x2, wq_ref[...], preferred_element_type=jnp.float32) + bq_ref[...]
    k = jnp.dot(x2, wk_ref[...], preferred_element_type=jnp.float32) + bk_ref[...]
    v = jnp.dot(x2, wv_ref[...], preferred_element_type=jnp.float32) + bv_ref[...]

    # Fold 1/sqrt(hidden) into q: S*H multiplies instead of S*S on the scores.
    q = q * scale

    q = q.reshape(Bb, S, Hp).astype(cdt)
    k = k.reshape(Bb, S, Hp).astype(cdt)
    v = v.reshape(Bb, S, Hp).astype(cdt)

    # scores = q @ k^T, contracting last dims directly (no transposed copy).
    scores = lax.dot_general(
        q, k, dimension_numbers=(((2,), (2,)), ((0,), (0,))),
        preferred_element_type=jnp.float32)                     # (Bb, S, S)

    # Numerically stable softmax in f32 (EUP exp + approx reciprocal).
    m = jnp.max(scores, axis=-1, keepdims=True)
    e = jnp.exp(scores - m)
    denom = jnp.sum(e, axis=-1, keepdims=True)
    weights = e * pl.reciprocal(denom, approx=True)             # (Bb, S, S)

    # out = weights @ v  (f32 accumulation, MXU inputs in compute dtype).
    out = lax.dot_general(
        weights.astype(cdt), v,
        dimension_numbers=(((2,), (1,)), ((0,), (0,))),
        preferred_element_type=jnp.float32)                     # (Bb, S, Hp)

    o_ref[...] = out.astype(o_ref.dtype)


def attention(x, wq, wk, wv, bq, bk, bv):
    """x: [B, S, F]; w*: [F, H]; b*: [H].  Returns [B, S, H] in x.dtype."""
    B, S, F = x.shape
    H = wq.shape[1]

    # Lane-dense padding of F and H (exact: zero rows/cols contribute nothing).
    Fp = _round_up(max(F, 128), 128)
    Hp = _round_up(max(H, 128), 128)

    def pad_w(w):
        if Fp == F and Hp == H:
            return w
        return jnp.pad(w, ((0, Fp - F), (0, Hp - H)))

    def pad_b(b):
        if Hp != H:
            b = jnp.pad(b, (0, Hp - H))
        return b.reshape(1, Hp)

    xp = jnp.pad(x, ((0, 0), (0, 0), (0, Fp - F))) if Fp != F else x
    wqp, wkp, wvp = pad_w(wq), pad_w(wk), pad_w(wv)
    bq2, bk2, bv2 = pad_b(bq), pad_b(bk), pad_b(bv)

    # Batch-block: fuse batch rows so the projection M dim is large (<=512 rows
    # per step); fall back to >=2 grid steps (v7x megacore) only when each
    # step would still be MXU-sized.
    divs = [d for d in range(1, B + 1) if B % d == 0 and d * S <= 512]
    Bb = max(divs) if divs else 1
    if B // Bb == 1 and Bb % 2 == 0 and (Bb // 2) * S >= 128:
        Bb //= 2

    grid = (B // Bb,)
    scale = 1.0 / math.sqrt(float(H))  # use the *unpadded* hidden dim

    itemsize = jnp.dtype(x.dtype).itemsize
    flops = 2 * B * S * Fp * Hp * 3 + 2 * B * S * S * Hp * 2
    transcendentals = B * S * S + B * S
    bytes_accessed = itemsize * (B * S * Fp + 3 * Fp * Hp + 3 * Hp + B * S * Hp)

    vmem_need = (
        2 * Bb * S * (Fp + Hp) * itemsize            # double-buffered x / out blocks
        + 2 * 3 * (Fp * Hp + Hp) * itemsize          # weight / bias tiles
        + (Bb * S * Fp + 3 * Bb * S * Hp + 2 * Bb * S * S) * 4  # f32 intermediates
    )
    vmem_limit = int(min(max(2 * vmem_need, 8 << 20), 48 << 20))

    grid_spec = pltpu.PrefetchScalarGridSpec(
        num_scalar_prefetch=0,
        grid=grid,
        in_specs=[
            pl.BlockSpec((Bb, S, Fp), lambda b: (b, 0, 0)),   # x (batch-block)
            pl.BlockSpec((Fp, Hp), lambda b: (0, 0)),          # Wq
            pl.BlockSpec((Fp, Hp), lambda b: (0, 0)),          # Wk
            pl.BlockSpec((Fp, Hp), lambda b: (0, 0)),          # Wv
            pl.BlockSpec((1, Hp), lambda b: (0, 0)),           # bq
            pl.BlockSpec((1, Hp), lambda b: (0, 0)),           # bk
            pl.BlockSpec((1, Hp), lambda b: (0, 0)),           # bv
        ],
        out_specs=pl.BlockSpec((Bb, S, Hp), lambda b: (b, 0, 0)),
    )

    out_padded = pl.pallas_call(
        functools.partial(_attention_kernel, scale=scale),
        out_shape=jax.ShapeDtypeStruct((B, S, Hp), x.dtype),
        grid_spec=grid_spec,
        compiler_params=pltpu.CompilerParams(
            dimension_semantics=("parallel",),
            vmem_limit_bytes=vmem_limit),
        cost_estimate=pl.CostEstimate(
            flops=flops,
            transcendentals=transcendentals,
            bytes_accessed=bytes_accessed),
    )(xp, wqp, wkp, wvp, bq2, bk2, bv2)

    return out_padded[..., :H] if Hp != H else out_padded


def _reference(x, wq, wk, wv, bq, bk, bv):
    q = x @ wq + bq
    k = x @ wk + bk
    v = x @ wv + bv
    scores = jnp.einsum("bsh,bth->bst", q, k) / jnp.sqrt(jnp.float32(q.shape[-1]))
    w = jax.nn.softmax(scores, axis=-1)
    return jnp.einsum("bst,bth->bsh", w, v)


if __name__ == "__main__":
    key = jax.random.PRNGKey(0)
    B, S, F, H = 2, 8, 32, 32

    kx, kwq, kwk, kwv, kbq, kbk, kbv = jax.random.split(key, 7)

    bound = 1.0 / math.sqrt(float(F))
    x = jax.random.normal(kx, (B, S, F), dtype=jnp.float32)
    wq = jax.random.uniform(kwq, (F, H), minval=-bound, maxval=bound, dtype=jnp.float32)
    wk = jax.random.uniform(kwk, (F, H), minval=-bound, maxval=bound, dtype=jnp.float32)
    wv = jax.random.uniform(kwv, (F, H), minval=-bound, maxval=bound, dtype=jnp.float32)
    bq = jax.random.uniform(kbq, (H,), minval=-bound, maxval=bound, dtype=jnp.float32)
    bk = jax.random.uniform(kbk, (H,), minval=-bound, maxval=bound, dtype=jnp.float32)
    bv = jax.random.uniform(kbv, (H,), minval=-bound, maxval=bound, dtype=jnp.float32)

    out = attention(x, wq, wk, wv, bq, bk, bv)
    out = jax.block_until_ready(out)

    ref = _reference(x, wq, wk, wv, bq, bk, bv)
    assert out.shape == (B, S, H)
    # Tolerance accounts for the EUP approximate reciprocal in the softmax.
    assert jnp.allclose(out, ref, atol=2e-3, rtol=2e-3), "mismatch vs reference"

    print("KERNEL_OK")
</pallas_src>

<mosaic_0001>
module attributes {stable_mosaic.version = 11 : i64} {
  func.func @_attention_kernel(%arg0: i32, %arg1: memref<2x8x128xf32, #tpu.memory_space<vmem>>, %arg2: memref<128x128xf32, #tpu.memory_space<vmem>>, %arg3: memref<128x128xf32, #tpu.memory_space<vmem>>, %arg4: memref<128x128xf32, #tpu.memory_space<vmem>>, %arg5: memref<1x128xf32, #tpu.memory_space<vmem>>, %arg6: memref<1x128xf32, #tpu.memory_space<vmem>>, %arg7: memref<1x128xf32, #tpu.memory_space<vmem>>, %arg8: memref<2x8x128xf32, #tpu.memory_space<vmem>>) attributes {dimension_semantics = [#tpu.dimension_semantics<parallel>], iteration_bounds = array<i64: 1>, scalar_prefetch = 0 : i64, scratch_operands = 0 : i64, tpu.core_type = #tpu.core_type<tc>, window_params = [{transform_indices = @transform_0, window_bounds = array<i64: 2, 8, 128>}, {pipeline_mode = #tpu.pipeline_mode<synchronous>, transform_indices = @transform_1, window_bounds = array<i64: 128, 128>}, {pipeline_mode = #tpu.pipeline_mode<synchronous>, transform_indices = @transform_2, window_bounds = array<i64: 128, 128>}, {pipeline_mode = #tpu.pipeline_mode<synchronous>, transform_indices = @transform_3, window_bounds = array<i64: 128, 128>}, {pipeline_mode = #tpu.pipeline_mode<synchronous>, transform_indices = @transform_4, window_bounds = array<i64: 1, 128>}, {pipeline_mode = #tpu.pipeline_mode<synchronous>, transform_indices = @transform_5, window_bounds = array<i64: 1, 128>}, {pipeline_mode = #tpu.pipeline_mode<synchronous>, transform_indices = @transform_6, window_bounds = array<i64: 1, 128>}, {transform_indices = @transform_7, window_bounds = array<i64: 2, 8, 128>}]} {
    %c0 = arith.constant 0 : index
    %c0_0 = arith.constant 0 : index
    %c0_1 = arith.constant 0 : index
    %0 = vector.load %arg1[%c0, %c0_0, %c0_1] : memref<2x8x128xf32, #tpu.memory_space<vmem>>, vector<2x8x128xf32>
    %1 = vector.shape_cast %0 : vector<2x8x128xf32> to vector<16x128xf32>
    %c0_2 = arith.constant 0 : index
    %c0_3 = arith.constant 0 : index
    %2 = vector.load %arg2[%c0_2, %c0_3] : memref<128x128xf32, #tpu.memory_space<vmem>>, vector<128x128xf32>
    %cst = arith.constant dense<0.000000e+00> : vector<16x128xf32>
    %3 = tpu.matmul %1, %2, %cst {dimension_numbers = #tpu.dot_dimension_numbers<[1], [0], [0], [1], [0, 0, 1, 1], [], []>} : vector<16x128xf32>, vector<128x128xf32>, vector<16x128xf32> -> vector<16x128xf32>
    %c0_4 = arith.constant 0 : index
    %c0_5 = arith.constant 0 : index
    %4 = vector.load %arg5[%c0_4, %c0_5] : memref<1x128xf32, #tpu.memory_space<vmem>>, vector<1x128xf32>
    %5 = vector.broadcast %4 : vector<1x128xf32> to vector<16x128xf32>
    %6 = arith.addf %3, %5 : vector<16x128xf32>
    %c0_6 = arith.constant 0 : index
    %c0_7 = arith.constant 0 : index
    %7 = vector.load %arg3[%c0_6, %c0_7] : memref<128x128xf32, #tpu.memory_space<vmem>>, vector<128x128xf32>
    %cst_8 = arith.constant dense<0.000000e+00> : vector<16x128xf32>
    %8 = tpu.matmul %1, %7, %cst_8 {dimension_numbers = #tpu.dot_dimension_numbers<[1], [0], [0], [1], [0, 0, 1, 1], [], []>} : vector<16x128xf32>, vector<128x128xf32>, vector<16x128xf32> -> vector<16x128xf32>
    %c0_9 = arith.constant 0 : index
    %c0_10 = arith.constant 0 : index
    %9 = vector.load %arg6[%c0_9, %c0_10] : memref<1x128xf32, #tpu.memory_space<vmem>>, vector<1x128xf32>
    %10 = vector.broadcast %9 : vector<1x128xf32> to vector<16x128xf32>
    %11 = arith.addf %8, %10 : vector<16x128xf32>
    %c0_11 = arith.constant 0 : index
    %c0_12 = arith.constant 0 : index
    %12 = vector.load %arg4[%c0_11, %c0_12] : memref<128x128xf32, #tpu.memory_space<vmem>>, vector<128x128xf32>
    %cst_13 = arith.constant dense<0.000000e+00> : vector<16x128xf32>
    %13 = tpu.matmul %1, %12, %cst_13 {dimension_numbers = #tpu.dot_dimension_numbers<[1], [0], [0], [1], [0, 0, 1, 1], [], []>} : vector<16x128xf32>, vector<128x128xf32>, vector<16x128xf32> -> vector<16x128xf32>
    %c0_14 = arith.constant 0 : index
    %c0_15 = arith.constant 0 : index
    %14 = vector.load %arg7[%c0_14, %c0_15] : memref<1x128xf32, #tpu.memory_space<vmem>>, vector<1x128xf32>
    %15 = vector.broadcast %14 : vector<1x128xf32> to vector<16x128xf32>
    %16 = arith.addf %13, %15 : vector<16x128xf32>
    %cst_16 = arith.constant 0.176776692 : f32
    %17 = vector.broadcast %cst_16 : f32 to vector<16x128xf32>
    %18 = arith.mulf %6, %17 : vector<16x128xf32>
    %19 = vector.shape_cast %18 : vector<16x128xf32> to vector<2x8x128xf32>
    %20 = vector.shape_cast %11 : vector<16x128xf32> to vector<2x8x128xf32>
    %21 = vector.shape_cast %16 : vector<16x128xf32> to vector<2x8x128xf32>
    %cst_17 = arith.constant dense<0.000000e+00> : vector<2x8x8xf32>
    %22 = tpu.matmul %19, %20, %cst_17 {dimension_numbers = #tpu.dot_dimension_numbers<[2], [2], [1], [1], [0, 0, 0, 1, 1, 1], [0], [0]>} : vector<2x8x128xf32>, vector<2x8x128xf32>, vector<2x8x8xf32> -> vector<2x8x8xf32>
    %cst_18 = arith.constant dense<0xFF800000> : vector<2x8xf32>
    %23 = vector.multi_reduction <maximumf>, %22, %cst_18 [2] : vector<2x8x8xf32> to vector<2x8xf32>
    %24 = vector.shape_cast %23 : vector<2x8xf32> to vector<2x8x1xf32>
    %25 = vector.broadcast %24 : vector<2x8x1xf32> to vector<2x8x8xf32>
    %26 = arith.subf %22, %25 : vector<2x8x8xf32>
    %27 = math.exp %26 : vector<2x8x8xf32>
    %cst_19 = arith.constant dense<0.000000e+00> : vector<2x8xf32>
    %28 = vector.multi_reduction <add>, %27, %cst_19 [2] : vector<2x8x8xf32> to vector<2x8xf32>
    %29 = vector.shape_cast %28 : vector<2x8xf32> to vector<2x8x1xf32>
    %30 = tpu.reciprocal %29 {approx = true} : vector<2x8x1xf32> -> vector<2x8x1xf32>
    %31 = vector.broadcast %30 : vector<2x8x1xf32> to vector<2x8x8xf32>
    %32 = arith.mulf %27, %31 : vector<2x8x8xf32>
    %cst_20 = arith.constant dense<0.000000e+00> : vector<2x8x128xf32>
    %33 = tpu.matmul %32, %21, %cst_20 {dimension_numbers = #tpu.dot_dimension_numbers<[2], [1], [1], [2], [0, 0, 0, 1, 1, 2], [0], [0]>} : vector<2x8x8xf32>, vector<2x8x128xf32>, vector<2x8x128xf32> -> vector<2x8x128xf32>
    %c0_21 = arith.constant 0 : index
    %c0_22 = arith.constant 0 : index
    %c0_23 = arith.constant 0 : index
    %34 = vector.load %arg8[%c0_21, %c0_22, %c0_23] : memref<2x8x128xf32, #tpu.memory_space<vmem>>, vector<2x8x128xf32>
    tpu.vector_store %arg8[%c0_21, %c0_22, %c0_23], %33 {strides = array<i32>} : memref<2x8x128xf32, #tpu.memory_space<vmem>>, vector<2x8x128xf32>,
    return
  }
  func.func @transform_0(%arg0: i32) -> (i32, i32, i32) {
    %c0_i32 = arith.constant 0 : i32
    %c0_i32_0 = arith.constant 0 : i32
    %c0_i32_1 = arith.constant 0 : i32
    return %arg0, %c0_i32, %c0_i32_0 : i32, i32, i32
  }
  func.func @transform_1(%arg0: i32) -> (i32, i32) {
    %c0_i32 = arith.constant 0 : i32
    %c0_i32_0 = arith.constant 0 : i32
    %c0_i32_1 = arith.constant 0 : i32
    return %c0_i32, %c0_i32_0 : i32, i32
  }
  func.func @transform_2(%arg0: i32) -> (i32, i32) {
    %c0_i32 = arith.constant 0 : i32
    %c0_i32_0 = arith.constant 0 : i32
    %c0_i32_1 = arith.constant 0 : i32
    return %c0_i32, %c0_i32_0 : i32, i32
  }
  func.func @transform_3(%arg0: i32) -> (i32, i32) {
    %c0_i32 = arith.constant 0 : i32
    %c0_i32_0 = arith.constant 0 : i32
    %c0_i32_1 = arith.constant 0 : i32
    return %c0_i32, %c0_i32_0 : i32, i32
  }
  func.func @transform_4(%arg0: i32) -> (i32, i32) {
    %c0_i32 = arith.constant 0 : i32
    %c0_i32_0 = arith.constant 0 : i32
    %c0_i32_1 = arith.constant 0 : i32
    return %c0_i32, %c0_i32_0 : i32, i32
  }
  func.func @transform_5(%arg0: i32) -> (i32, i32) {
    %c0_i32 = arith.constant 0 : i32
    %c0_i32_0 = arith.constant 0 : i32
    %c0_i32_1 = arith.constant 0 : i32
    return %c0_i32, %c0_i32_0 : i32, i32
  }
  func.func @transform_6(%arg0: i32) -> (i32, i32) {
    %c0_i32 = arith.constant 0 : i32
    %c0_i32_0 = arith.constant 0 : i32
    %c0_i32_1 = arith.constant 0 : i32
    return %c0_i32, %c0_i32_0 : i32, i32
  }
  func.func @transform_7(%arg0: i32) -> (i32, i32, i32) {
    %c0_i32 = arith.constant 0 : i32
    %c0_i32_0 = arith.constant 0 : i32
    %c0_i32_1 = arith.constant 0 : i32
    return %arg0, %c0_i32, %c0_i32_0 : i32, i32, i32
  }
}

</mosaic_0001>

<bundles_post_ra>
// kernel: tpu_custom_call.1
= control target key start
LH: loop header
LB: loop body
LE: loop exit
PB: predicated region body
PF: predicated region fallthrough
CT: control target
= control target key end

     0   :  { %12 = vsyncpa [#allocation3], 0  ;;  %s1138_s0 = inlined_call_operand.hbm [shape: f32[2,8,128], index: 0, kind: input, shape index: {}]   ;;  %s1139_s1 = inlined_call_operand.hbm [shape: f32[128,128], index: 1, kind: input, shape index: {}]   ;;  %s1140_s2 = inlined_call_operand.hbm [shape: f32[128,128], index: 2, kind: input, shape index: {}]   ;;  %s1141_s3 = inlined_call_operand.hbm [shape: f32[128,128], index: 3, kind: input, shape index: {}]   ;;  %s1142_s4 = inlined_call_operand.vmem [shape: f32[1,128], index: 4, kind: input, shape index: {}]   ;;  %s1143_s5 = inlined_call_operand.vmem [shape: f32[1,128], index: 5, kind: input, shape index: {}]   ;;  %s1144_s6 = inlined_call_operand.vmem [shape: f32[1,128], index: 6, kind: input, shape index: {}]   ;;  %s1145_s7 = inlined_call_operand.hbm [shape: f32[2,8,128], index: 7, kind: output, shape index: {}]  }
   0x1   :  { %13 = vsyncpa [#allocation6], 0 }
   0x2   :  { %14 = vsyncpa [#allocation9], 0 }
   0x3   :  { %15 = vsyncpa [#allocation4], 0  ;;  %s1027_s24 = smov [#allocation5]   ;;  %s1028_s26 = smov [#allocation2]  }
   0x4   :  { %s33_s25 = sshll.u32 %s1027_s24, 4  ;;  %s21_s27 = sshll.u32 %s1028_s26, 4  ;;  %s34_s25 = int_to_ptr.vmem [resolvable:$true] %s33_s25  ;;  %s22_s27 = int_to_ptr.vmem [resolvable:$true] %s21_s27 }
   0x5   :  { %s927_s28 = scalar_lea.vmem %s34_s25, 2048  ;;  %p932_p1 = scmp.lt.s32.totalorder %s34_s25, %s34_s25 }
   0x6   :  { %p928_p0 = scmp.ne.s32.totalorder %s34_s25, %s927_s28  ;;  %p933_p2 = scmp.lt.s32.totalorder %s927_s28, %s927_s28 }
   0x8   :  { %p934_p3 = por %p933_p2, %p932_p1 }
   0xa   :  { %p935_p4 = pnand %p934_p3, %p928_p0 }
   0xc   :  { %938 = shalt.err (!%p935_p4)
}
   0xd   :  { %s1029_s29 = smov 128   ;;  %s1030_s30 = smov 8  }
   0xe   :  { %39 = dma.hbm_to_vmem [thread:$0]  %s1139_s1, 2048, %s34_s25, [#allocation6], %s1029_s29, %s1029_s29, %s1030_s30  }
   0xf   :  { %s947_s10 = scalar_lea.vmem %s22_s27, 256  ;;  %p952_p6 = scmp.lt.s32.totalorder %s22_s27, %s22_s27 }
  0x10   :  { %p948_p5 = scmp.ne.s32.totalorder %s22_s27, %s947_s10  ;;  %p953_p7 = scmp.lt.s32.totalorder %s947_s10, %s947_s10 }
  0x12   :  { %p954_p8 = por %p953_p7, %p952_p6 }
  0x14   :  { %p955_p9 = pnand %p954_p8, %p948_p5 }
  0x16   :  { %958 = shalt.err (!%p955_p9)
}
  0x17   :  { %27 = dma.hbm_to_vmem [thread:$0]  %s1138_s0, 256, %s22_s27, [#allocation3], %s1029_s29, %s1029_s29, %s1030_s30  }
  0x18   :  { %s1031_s13 = smov [#allocation7]   ;;  %s1032_s15 = smov [#allocation8]  }
  0x19   :  { %s45_s14 = sshll.u32 %s1031_s13, 4  ;;  %s57_s16 = sshll.u32 %s1032_s15, 4  ;;  %s46_s14 = int_to_ptr.vmem [resolvable:$true] %s45_s14  ;;  %s58_s16 = int_to_ptr.vmem [resolvable:$true] %s57_s16 }
  0x1a   :  { %s967_s1 = scalar_lea.vmem %s46_s14, 2048  ;;  %p972_p11 = scmp.lt.s32.totalorder %s46_s14, %s46_s14 }
  0x1b   :  { %p968_p10 = scmp.ne.s32.totalorder %s46_s14, %s967_s1  ;;  %p973_p12 = scmp.lt.s32.totalorder %s967_s1, %s967_s1 }
  0x1d   :  { %p974_p13 = por %p973_p12, %p972_p11 }
  0x1f   :  { %p975_p0 = pnand %p974_p13, %p968_p10 }
  0x21   :  { %978 = shalt.err (!%p975_p0)
}
  0x22   :  { %51 = dma.hbm_to_vmem [thread:$0]  %s1140_s2, 2048, %s46_s14, [#allocation6], %s1029_s29, %s1029_s29, %s1030_s30  }
  0x23   :  { %s987_s0 = scalar_lea.vmem %s58_s16, 2048  ;;  %p992_p2 = scmp.lt.s32.totalorder %s58_s16, %s58_s16 }
  0x24   :  { %p988_p1 = scmp.ne.s32.totalorder %s58_s16, %s987_s0  ;;  %p993_p3 = scmp.lt.s32.totalorder %s987_s0, %s987_s0 }
  0x26   :  { %p994_p4 = por %p993_p3, %p992_p2 }
  0x28   :  { %p995_p5 = pnand %p994_p4, %p988_p1 }
  0x2a   :  { %998 = shalt.err (!%p995_p5)
}
  0x2b   :  { %63 = dma.hbm_to_vmem [thread:$0]  %s1141_s3, 2048, %s58_s16, [#allocation9], %s1029_s29, %s1029_s29, %s1030_s30  }
  0x2c   :  { %1019 = dma.done.wait [#allocation3], 256  }
  0x2d   :  { %1020 = vsyncadd [#allocation3], 4294967040 }
  0x2e   :  { %1021 = dma.done.wait [#allocation6], 4096  }
  0x2f   :  { %1022 = vsyncadd [#allocation6], 4294963200 }
  0x30   :  { %1023 = dma.done.wait [#allocation9], 2048  }
  0x31   :  { %1024 = vsyncadd [#allocation9], 4294965248  ;;  %v99_v0 = vld [vmem:[#allocation5 + $0x78] sm:$0xff]  ;;  %v98_v2 = vld [vmem:[#allocation5 + $0x70] sm:$0xff]  ;;  %v1033_v34 = vmov 0.0   ;;  %vm1034_vm0 = vmmov 0  }
  0x32   :  { %v197_v1 = vld [vmem:[#allocation7 + $0x78] sm:$0xff]  ;;  %777 = vmatprep.subr.mxu0 %v99_v0  ;;  %v196_v3 = vld [vmem:[#allocation7 + $0x70] sm:$0xff]  ;;  %v97_v4 = vld [vmem:[#allocation5 + $0x68] sm:$0xff]  ;;  %vm520_vm1 = vcmask 64512  }
  0x33   :  { %812 = vmatprep.subr.mxu1 %v197_v1  ;;  %778 = vmatpush3.msra.mxu0 %v99_v0  ;;  %v195_v5 = vld [vmem:[#allocation7 + $0x68] sm:$0xff]  ;;  %v96_v6 = vld [vmem:[#allocation5 + $0x60] sm:$0xff]  ;;  %v95_v8 = vld [vmem:[#allocation5 + $0x58] sm:$0xff] }
  0x34   :  { %813 = vmatpush3.msra.mxu1 %v197_v1  ;;  %779 = vmatprep.subr.mxu0 %v98_v2  ;;  %v194_v7 = vld [vmem:[#allocation7 + $0x60] sm:$0xff]  ;;  %v193_v9 = vld [vmem:[#allocation7 + $0x58] sm:$0xff]  ;;  %v94_v10 = vld [vmem:[#allocation5 + $0x50] sm:$0xff] }
  0x35   :  { %814 = vmatprep.subr.mxu1 %v196_v3  ;;  %780 = vmatpush3.msra.mxu0 %v98_v2  ;;  %v192_v11 = vld [vmem:[#allocation7 + $0x50] sm:$0xff]  ;;  %v93_v12 = vld [vmem:[#allocation5 + $0x48] sm:$0xff]  ;;  %v92_v14 = vld [vmem:[#allocation5 + $0x40] sm:$0xff] }
  0x36   :  { %815 = vmatpush3.msra.mxu1 %v196_v3  ;;  %781 = vmatprep.subr.mxu0 %v97_v4  ;;  %v191_v13 = vld [vmem:[#allocation7 + $0x48] sm:$0xff]  ;;  %v190_v15 = vld [vmem:[#allocation7 + $0x40] sm:$0xff]  ;;  %v91_v16 = vld [vmem:[#allocation5 + $0x38] sm:$0xff] }
  0x37   :  { %816 = vmatprep.subr.mxu1 %v195_v5  ;;  %782 = vmatpush3.msra.mxu0 %v97_v4  ;;  %v189_v17 = vld [vmem:[#allocation7 + $0x38] sm:$0xff]  ;;  %v90_v18 = vld [vmem:[#allocation5 + $0x30] sm:$0xff]  ;;  %v89_v20 = vld [vmem:[#allocation5 + $0x28] sm:$0xff] }
  0x38   :  { %817 = vmatpush3.msra.mxu1 %v195_v5  ;;  %783 = vmatprep.subr.mxu0 %v96_v6  ;;  %v188_v19 = vld [vmem:[#allocation7 + $0x30] sm:$0xff]  ;;  %v187_v21 = vld [vmem:[#allocation7 + $0x28] sm:$0xff]  ;;  %v88_v22 = vld [vmem:[#allocation5 + $0x20] sm:$0xff] }
  0x39   :  { %818 = vmatprep.subr.mxu1 %v194_v7  ;;  %784 = vmatpush3.msra.mxu0 %v96_v6  ;;  %v186_v23 = vld [vmem:[#allocation7 + $0x20] sm:$0xff]  ;;  %v87_v24 = vld [vmem:[#allocation5 + $0x18] sm:$0xff]  ;;  %v86_v26 = vld [vmem:[#allocation5 + $0x10] sm:$0xff] }
  0x3a   :  { %819 = vmatpush3.msra.mxu1 %v194_v7  ;;  %785 = vmatprep.subr.mxu0 %v95_v8  ;;  %v185_v25 = vld [vmem:[#allocation7 + $0x18] sm:$0xff]  ;;  %v184_v27 = vld [vmem:[#allocation7 + $0x10] sm:$0xff]  ;;  %v85_v28 = vld [vmem:[#allocation5 + $0x8] sm:$0xff] }
  0x3b   :  { %820 = vmatprep.subr.mxu1 %v193_v9  ;;  %786 = vmatpush3.msra.mxu0 %v95_v8  ;;  %v183_v29 = vld [vmem:[#allocation7 + $0x8] sm:$0xff]  ;;  %v84_v30 = vld [vmem:[#allocation5] sm:$0xff]  ;;  %v82_v32 = vld [vmem:[#allocation2] sm:$0xff] }
  0x3c   :  { %821 = vmatpush3.msra.mxu1 %v193_v9  ;;  %787 = vmatprep.subr.mxu0 %v94_v10  ;;  %v182_v31 = vld [vmem:[#allocation7] sm:$0xff]  ;;  %v1100_v33 = vld [vmem:[#allocation2 + $0x8] sm:$0xff]  ;;  %v710_v36 = vld [vmem:[%s1142_s4] ss:$0 sm:$0xff] }
  0x3d   :  { %822 = vmatprep.subr.mxu1 %v192_v11  ;;  %788 = vmatpush3.msra.mxu0 %v94_v10  ;;  %v711_v38 = vld [vmem:[%s1143_s5] ss:$0 sm:$0xff]  ;;  %v295_v47 = vld [vmem:[#allocation8 + $0x78] sm:$0xff]  ;;  %v293_v49 = vld [vmem:[#allocation8 + $0x68] sm:$0xff] }
  0x3e   :  { %823 = vmatpush3.msra.mxu1 %v192_v11  ;;  %789 = vmatprep.subr.mxu0 %v93_v12  ;;  %v294_v48 = vld [vmem:[#allocation8 + $0x70] sm:$0xff]  ;;  %v292_v50 = vld [vmem:[#allocation8 + $0x60] sm:$0xff]  ;;  %v291_v51 = vld [vmem:[#allocation8 + $0x58] sm:$0xff] }
  0x3f   :  { %824 = vmatprep.subr.mxu1 %v191_v13  ;;  %790 = vmatpush3.msra.mxu0 %v93_v12  ;;  %v290_v52 = vld [vmem:[#allocation8 + $0x50] sm:$0xff]  ;;  %v289_v53 = vld [vmem:[#allocation8 + $0x48] sm:$0xff]  ;;  %v288_v54 = vld [vmem:[#allocation8 + $0x40] sm:$0xff] }
  0x40   :  { %825 = vmatpush3.msra.mxu1 %v191_v13  ;;  %791 = vmatprep.subr.mxu0 %v92_v14  ;;  %v287_v55 = vld [vmem:[#allocation8 + $0x38] sm:$0xff]  ;;  %v286_v56 = vld [vmem:[#allocation8 + $0x30] sm:$0xff]  ;;  %v285_v57 = vld [vmem:[#allocation8 + $0x28] sm:$0xff] }
  0x41   :  { %826 = vmatprep.subr.mxu1 %v190_v15  ;;  %792 = vmatpush3.msra.mxu0 %v92_v14  ;;  %v284_v58 = vld [vmem:[#allocation8 + $0x20] sm:$0xff]  ;;  %v283_v59 = vld [vmem:[#allocation8 + $0x18] sm:$0xff]  ;;  %v282_v60 = vld [vmem:[#allocation8 + $0x10] sm:$0xff] }
  0x42   :  { %827 = vmatpush3.msra.mxu1 %v190_v15  ;;  %793 = vmatprep.subr.mxu0 %v91_v16  ;;  %v281_v61 = vld [vmem:[#allocation8 + $0x8] sm:$0xff]  ;;  %v280_v62 = vld [vmem:[#allocation8] sm:$0xff] }
  0x43   :  { %828 = vmatprep.subr.mxu1 %v189_v17  ;;  %794 = vmatpush3.msra.mxu0 %v91_v16  ;;  %v712_v16 = vld [vmem:[%s1144_s6] ss:$0 sm:$0xff]  ;;  %s1035_s6 = smov [#allocation10]  }
  0x44   :  { %829 = vmatpush3.msra.mxu1 %v189_v17  ;;  %795 = vmatprep.subr.mxu0 %v90_v18  ;;  %s696_s23 = sshll.u32 %s1035_s6, 4  ;;  %s697_s23 = int_to_ptr.vmem [resolvable:$true] %s696_s23 }
  0x45   :  { %830 = vmatprep.subr.mxu1 %v188_v19  ;;  %796 = vmatpush3.msra.mxu0 %v90_v18  ;;  %s999_s24 = scalar_lea.vmem %s697_s23, 256  ;;  %p1004_p7 = scmp.lt.s32.totalorder %s697_s23, %s697_s23 }
  0x46   :  { %831 = vmatpush3.msra.mxu1 %v188_v19  ;;  %797 = vmatprep.subr.mxu0 %v89_v20  ;;  %p1000_p6 = scmp.ne.s32.totalorder %s697_s23, %s999_s24  ;;  %p1005_p8 = scmp.lt.s32.totalorder %s999_s24, %s999_s24 }
  0x47   :  { %832 = vmatprep.subr.mxu1 %v187_v21  ;;  %798 = vmatpush3.msra.mxu0 %v89_v20 }
  0x48   :  { %833 = vmatpush3.msra.mxu1 %v187_v21  ;;  %799 = vmatprep.subr.mxu0 %v88_v22  ;;  %p1006_p9 = por %p1005_p8, %p1004_p7 }
  0x49   :  { %834 = vmatprep.subr.mxu1 %v186_v23  ;;  %800 = vmatpush3.msra.mxu0 %v88_v22 }
  0x4a   :  { %835 = vmatpush3.msra.mxu1 %v186_v23  ;;  %801 = vmatprep.subr.mxu0 %v87_v24  ;;  %p1007_p10 = pnand %p1006_p9, %p1000_p6 }
  0x4b   :  { %836 = vmatprep.subr.mxu1 %v185_v25  ;;  %802 = vmatpush3.msra.mxu0 %v87_v24 }
  0x4c   :  { %837 = vmatpush3.msra.mxu1 %v185_v25  ;;  %803 = vmatprep.subr.mxu0 %v86_v26 }
  0x4d   :  { %838 = vmatprep.subr.mxu1 %v184_v27  ;;  %804 = vmatpush3.msra.mxu0 %v86_v26 }
  0x4e   :  { %839 = vmatpush3.msra.mxu1 %v184_v27  ;;  %805 = vmatprep.subr.mxu0 %v85_v28 }
  0x4f   :  { %840 = vmatprep.subr.mxu1 %v183_v29  ;;  %806 = vmatpush3.msra.mxu0 %v85_v28 }
  0x50   :  { %841 = vmatpush3.msra.mxu1 %v183_v29  ;;  %807 = vmatprep.subr.mxu0 %v84_v30 }
  0x51   :  { %842 = vmatprep.subr.mxu1 %v182_v31  ;;  %808 = vmatpush3.msra.mxu0 %v84_v30 }
  0x52   :  { %809 = vmatprep.mubr.f32.mxu0 %v82_v32  ;;  %843 = vmatpush3.msra.mxu1 %v182_v31 }
  0x53   :  { %844 = vmatprep.mubr.f32.mxu1 %v82_v32  ;;  %810 = vmatmul.mubr.f32.vlgmr.msra.gmra.mxu0 %v1100_v33 }
  0x54   :  { %845 = vmatmul.mubr.f32.vlgmr.msra.gmra.mxu1 %v1100_v33  ;;  %879 = vmatprep.mubr.f32.mxu0 %v82_v32 }
  0x55   :  { %882 = vmatprep.subr.mxu1 %v1033_v34  ;;  %884 = vmatprep.mubr.msk.f32.mxu1 %vm1034_vm0, %v1033_v34 }
  0x56   :  { %847 = vmatprep.subr.mxu0 %v295_v47 }
  0x57   :  { %848 = vmatpush3.msra.mxu0 %v295_v47 }
  0x58   :  { %849 = vmatprep.subr.mxu0 %v294_v48 }
  0x59   :  { %850 = vmatpush3.msra.mxu0 %v294_v48 }
  0x5a   :  { %851 = vmatprep.subr.mxu0 %v293_v49 }
  0x5b   :  { %852 = vmatpush3.msra.mxu0 %v293_v49 }
  0x5c   :  { %853 = vmatprep.subr.mxu0 %v292_v50 }
  0x5d   :  { %854 = vmatpush3.msra.mxu0 %v292_v50 }
  0x5e   :  { %855 = vmatprep.subr.mxu0 %v291_v51 }
  0x5f   :  { %856 = vmatpush3.msra.mxu0 %v291_v51 }
  0x60   :  { %857 = vmatprep.subr.mxu0 %v290_v52 }
  0x61   :  { %858 = vmatpush3.msra.mxu0 %v290_v52 }
  0x62   :  { %859 = vmatprep.subr.mxu0 %v289_v53 }
  0x63   :  { %860 = vmatpush3.msra.mxu0 %v289_v53 }
  0x64   :  { %861 = vmatprep.subr.mxu0 %v288_v54 }
  0x65   :  { %862 = vmatpush3.msra.mxu0 %v288_v54 }
  0x66   :  { %863 = vmatprep.subr.mxu0 %v287_v55 }
  0x67   :  { %864 = vmatpush3.msra.mxu0 %v287_v55 }
  0x68   :  { %865 = vmatprep.subr.mxu0 %v286_v56 }
  0x69   :  { %866 = vmatpush3.msra.mxu0 %v286_v56 }
  0x6a   :  { %867 = vmatprep.subr.mxu0 %v285_v57 }
  0x6b   :  { %868 = vmatpush3.msra.mxu0 %v285_v57 }
  0x6c   :  { %869 = vmatprep.subr.mxu0 %v284_v58 }
  0x6d   :  { %870 = vmatpush3.msra.mxu0 %v284_v58 }
  0x6e   :  { %871 = vmatprep.subr.mxu0 %v283_v59 }
  0x6f   :  { %872 = vmatpush3.msra.mxu0 %v283_v59 }
  0x70   :  { %873 = vmatprep.subr.mxu0 %v282_v60 }
  0x71   :  { %874 = vmatpush3.msra.mxu0 %v282_v60 }
  0x72   :  { %875 = vmatprep.subr.mxu0 %v281_v61 }
  0x73   :  { %876 = vmatpush3.msra.mxu0 %v281_v61 }
  0x74   :  { %877 = vmatprep.subr.mxu0 %v280_v62 }
  0x75   :  { %878 = vmatpush3.msra.mxu0 %v280_v62 }
  0x76   :  { %880 = vmatmul.mubr.f32.vlgmr.msra.gmra.mxu0 %v1100_v33 }
 0x113   :  { %v811_v35 = vpop.f32.mrf.mxu0 }
 0x114   :  { %v846_v37 = vpop.f32.mrf.mxu1  ;;  %v179_v44 = vadd.f32 %v811_v35, %v710_v36 }
 0x115   :  { %v173_v39 = vpop.f32.mrf.mxu0  ;;  %v277_v45 = vadd.f32 %v846_v37, %v711_v38 }
 0x116   :  { %v271_v40 = vpop.f32.mrf.mxu1  ;;  %v174_v41 = vadd.f32 %v710_v36, %v173_v39  ;;  %v379_v46 = vmul.f32 0.17677669, %v179_v44 }
 0x117   :  { %v272_v42 = vadd.f32 %v711_v38, %v271_v40 }
 0x118   :  { %v378_v43 = vmul.f32 0.17677669, %v174_v41 }
 0x119   :  { %883 = vmatpush3.xpose.msra.mxu1 %v272_v42 }
 0x11a   :  { %887 = vmatprep.subr.mxu1 %v1033_v34 }
 0x11c   :  { %885 = vmatmul.mubr.f32.vlgmr.msra.gmra.mxu1 %v378_v43 }
 0x11d   :  { %888 = vmatpush3.xpose.msra.mxu1 %v277_v45  ;;  %889 = vmatprep.mubr.msk.f32.mxu1 %vm1034_vm0, %v1033_v34 }
 0x11e   :  { %892 = vmatprep.subr.mxu1 %v1033_v34 }
 0x120   :  { %890 = vmatmul.mubr.f32.vlgmr.msra.gmra.mxu1 %v379_v46 }
 0x121   :  { %894 = vmatprep.mubr.msk.f32.mxu1 %vm1034_vm0, %v1033_v34 }
 0x136   :  { %v881_v15 = vpop.f32.mrf.mxu0 }
 0x137   :  { %v375_v17 = vadd.f32 %v881_v15, %v712_v16 }
 0x138   :  { %v369_v18 = vpop.f32.mrf.mxu0 }
 0x139   :  { %v370_v19 = vadd.f32 %v712_v16, %v369_v18 }
 0x13b   :  { %893 = vmatpush3.msra.mxu1 %v370_v19 }
 0x13c   :  { %897 = vmatprep.subr.mxu1 %v1033_v34 }
 0x1dc   :  { %v446_v63 = vpop.f32.mrf.mxu1 }
 0x1dd   :  { %v521_v0 = vsel %vm520_vm1, %v446_v63, -inf }
 0x1de   :  { %522 = vmax.xlane.f32.xlu0 %v521_v0  ;;  %v886_v1 = vpop.f32.mrf.mxu1 }
 0x1e0   :  { %v516_v2 = vpop.f32.mrf.mxu1 }
 0x1e1   :  { %v524_v3 = vsel %vm520_vm1, %v516_v2, -inf }
 0x1e2   :  { %525 = vmax.xlane.f32.xlu0 %v524_v3  ;;  %v891_v4 = vpop.f32.mrf.mxu1 }
 0x267   :  { %v523_v5 = vpop.xlane.xlu0 %522 }
 0x268   :  { %v527_v6 = vsub.f32 %v446_v63, %v523_v5 }
 0x26a   :  { %v529_v7 = vmul.f32 1.442695, %v527_v6 }
 0x26b   :  { %v526_v8 = vpop.xlane.xlu0 %525 }
 0x26c   :  { %911 = vpow2.f32 %v529_v7  ;;  %v528_v9 = vsub.f32 %v516_v2, %v526_v8 }
 0x26e   :  { %v531_v10 = vmul.f32 1.442695, %v528_v9 }
 0x270   :  { %913 = vpow2.f32 %v531_v10 }
 0x279   :  { %v912_v11 = vpop.eup %911 }
 0x27a   :  { %v533_v12 = vsel %vm520_vm1, %v912_v11, 0.0 }
 0x27b   :  { %534 = vadd.xlane.f32.xlu1 %v533_v12 }
 0x27d   :  { %v914_v13 = vpop.eup %913 }
 0x27e   :  { %v536_v14 = vsel %vm520_vm1, %v914_v13, 0.0 }
 0x27f   :  { %537 = vadd.xlane.f32.xlu1 %v536_v14 }
 0x304   :  { %v535_v20 = vpop.xlane.xlu1 %534 }
 0x305   :  { %915 = vrcp.f32 %v535_v20 }
 0x308   :  { %v538_v21 = vpop.xlane.xlu1 %537 }
 0x309   :  { %917 = vrcp.f32 %v538_v21 }
 0x312   :  { %v916_v22 = vpop.eup %915 }
 0x313   :  { %v541_v23 = vmul.f32 %v916_v22, %v912_v11 }
 0x315   :  { %895 = vmatmul.mubr.msk.f32.vlgmr.msra.gmra.mxu1 %vm520_vm1, %v541_v23 }
 0x316   :  { %v918_v24 = vpop.eup %917  ;;  %898 = vmatpush3.msra.mxu1 %v375_v17  ;;  %899 = vmatprep.mubr.msk.f32.mxu1 %vm1034_vm0, %v1033_v34 }
 0x317   :  { %v542_v25 = vmul.f32 %v918_v24, %v914_v13 }
 0x319   :  { %900 = vmatmul.mubr.msk.f32.vlgmr.msra.gmra.mxu1 %vm520_vm1, %v542_v25 }
 0x3d5   :  { %v612_v26 = vpop.f32.mrf.mxu1 }
 0x3d6   :  { %689 = vst [vmem:[#allocation10] sm:$0xff] %v612_v26 }
 0x3d7   :  { %v896_v27 = vpop.f32.mrf.mxu1 }
 0x3d9   :  { %v685_v28 = vpop.f32.mrf.mxu1 }
 0x3da   :  { %690 = vst [vmem:[#allocation10 + $0x8] sm:$0xff] %v685_v28 }
 0x3db   :  { %v901_v29 = vpop.f32.mrf.mxu1 }
 0x3dc   :  { %1010 = shalt.err (!%p1007_p10)
}
 0x3dd   :  { %702 = dma.vmem_to_hbm [thread:$0]  %s697_s23, 256, %s1145_s7, [#allocation4], %s1029_s29, %s1029_s29, %s1030_s30  }
 0x3de   :  { %1025 = dma.done.wait [#allocation4], 256  }
 0x3df   :  { %1026 = vsyncadd [#allocation4], 4294967040 }
 0x3e0   :  { %706 = vsyncpa [#allocation3], 1 }
 0x3e1   :  { %707 = vsyncpa [#allocation6], 1 }
 0x3e2   :  { %708 = vsyncpa [#allocation9], 1 }
 0x3e3   :  { %709 = vsyncpa [#allocation4], 1 }

</bundles_post_ra>
